<compile_context>
chip_gen: v5e
topology: v5e:2x2
jax: 0.10.0
libtpu: 0.0.40
codegen_flags: <defaults>
</compile_context>

<pallas_src>
import jax
import jax.numpy as jnp
from jax.experimental import pallas as pl
from jax.experimental.pallas import tpu as pltpu

LANE = 128        # lane width: pad hidden/logit feature dims to multiples of 128
SUBLANE = 8       # f32 sublane width
NEG_BIG = -1e30   # "-inf" stand-in baked into padded b3 columns


def _round_up(n, m):
    return ((n + m - 1) // m) * m


def _pad2d(a, rows, cols, dtype, fill=0.0):
    """Cast and pad a 2-D array to (rows, cols) with a constant fill value."""
    r, c = a.shape
    return jnp.pad(a.astype(dtype), ((0, rows - r), (0, cols - c)),
                   constant_values=fill)


def _vmem_budget():
    """(auto-sizer budget, scoped vmem_limit_bytes) derived from the chip."""
    try:
        cap = int(pltpu.get_tpu_info().vmem_capacity_bytes)
    except Exception:
        cap = None
    if not cap:
        cap = 64 * 1024 * 1024          # conservative fallback (v7x per-core VMEM)
    limit = cap * 3 // 4                # ~96 MiB on v5e/v6e, ~48 MiB on v7x
    budget = limit * 4 // 5             # headroom for compiler scratch / spills
    return budget, limit


def _choose_batch_tile(B, per_row, avail, max_tile):
    """Pick batch tile TB and padded batch Bp (a multiple of TB)."""
    cap = max(avail // max(per_row, 1), SUBLANE)
    cap = min(cap, max_tile)
    if B <= min(cap, 512):
        # Small batch: single grid step, block == full batch dim, no padding.
        return B, B
    # MXU-friendly alignment: 256-row tiles when they fit, else 16 (bf16 pack).
    if cap >= 256:
        align = 256
    elif cap >= 16:
        align = 16
    else:
        align = SUBLANE
    tb = max((cap // align) * align, align)
    # Keep >= 2 grid steps so the "parallel" batch axis can use v7x's 2 cores.
    tb = min(tb, _round_up(-(-B // 2), align))
    tb = max(tb, align)
    Bp = _round_up(B, tb)
    return tb, Bp


def mlp_kernel(x_ref, w1_ref, b1_ref, w2_ref, b2_ref, w3_ref, b3_ref, o_ref):
    out_size = o_ref.shape[-1]
    # fc1 + ReLU: bf16 MXU operands (cast in-register), f32 accumulate/elementwise.
    x = x_ref[...].astype(w1_ref.dtype)
    h1 = jnp.dot(x, w1_ref[...], preferred_element_type=jnp.float32)
    h1 = jnp.maximum(h1 + b1_ref[...], 0.0)
    # fc2 + ReLU
    h2 = jnp.dot(h1.astype(w2_ref.dtype), w2_ref[...],
                 preferred_element_type=jnp.float32)
    h2 = jnp.maximum(h2 + b2_ref[...], 0.0)
    # fc3 + bias.  Padded bias columns are NEG_BIG, so padded logits drop out
    # of the log-sum-exp for free (no iota/where needed).
    logits = jnp.dot(h2.astype(w3_ref.dtype), w3_ref[...],
                     preferred_element_type=jnp.float32) + b3_ref[...]
    # Numerically stable log_softmax over the last axis.
    m = jnp.max(logits, axis=-1, keepdims=True)
    shifted = logits - m
    lse = jnp.log(jnp.sum(jnp.exp(shifted), axis=-1, keepdims=True))
    # Store only the real output classes; padded columns never touch HBM.
    o_ref[...] = (shifted[:, :out_size] - lse).astype(o_ref.dtype)


def mlp_forward(x, w1, b1, w2, b2, w3, b3, input_size, *, max_batch_tile=2048):
    """x: any shape flattening to (-1, input_size); weights stored (in, out)."""
    x2d = x.reshape(-1, input_size).astype(jnp.float32)
    B = x2d.shape[0]
    h1_size, h2_size, out_size = w1.shape[1], w2.shape[1], w3.shape[1]

    # Lane-dense padded hidden / logit dims (input K is left at its native size).
    N1 = _round_up(h1_size, LANE)
    N2 = _round_up(h2_size, LANE)
    N3 = _round_up(out_size, LANE)

    budget, limit = _vmem_budget()

    # Resident (grid-invariant) VMEM: bf16 weights + f32 biases, counted x2
    # because Pallas double-buffers every input by default.
    resident = 2 * (2 * (input_size * N1 + N1 * N2 + N2 * N3)
                    + 4 * (N1 + N2 + N3))
    # Per-row VMEM: double-buffered f32 x/out tiles + f32/bf16 intermediates
    # (bf16 x copy, h1/h2 in f32+bf16, logits + softmax temporaries).
    per_row = (2 * 4 * input_size       # x tile (f32, double-buffered)
               + 2 * 4 * out_size       # out tile (f32, double-buffered)
               + 2 * input_size         # bf16 copy of x
               + 6 * N1 + 6 * N2        # h1/h2 in f32 + bf16
               + 16 * N3)               # logits + shifted/exp temporaries
    avail = budget - resident
    assert avail > per_row * SUBLANE, (
        "weights too large for the VMEM-resident plan; see TODO(synk) above")

    TB, Bp = _choose_batch_tile(B, per_row, avail, max_batch_tile)
    num_tiles = Bp // TB

    # Weight / bias prep (zero padding keeps padded hidden columns exactly 0;
    # NEG_BIG in b3's padded columns masks padded logits for free).
    w1_p = _pad2d(w1, input_size, N1, jnp.bfloat16)
    w2_p = _pad2d(w2, N1, N2, jnp.bfloat16)
    w3_p = _pad2d(w3, N2, N3, jnp.bfloat16)
    b1_p = _pad2d(b1.reshape(1, -1), 1, N1, jnp.float32)
    b2_p = _pad2d(b2.reshape(1, -1), 1, N2, jnp.float32)
    b3_p = _pad2d(b3.reshape(1, -1), 1, N3, jnp.float32, fill=NEG_BIG)

    # Only batch padding (if any); x stays f32 and unpadded along features.
    x_in = x2d if Bp == B else jnp.pad(x2d, ((0, Bp - B), (0, 0)))

    resident_spec = lambda a: pl.BlockSpec(a.shape, lambda i: (0, 0))

    out = pl.pallas_call(
        mlp_kernel,
        out_shape=jax.ShapeDtypeStruct((Bp, out_size), jnp.float32),
        grid=(num_tiles,),
        in_specs=[
            pl.BlockSpec((TB, input_size), lambda i: (i, 0)),  # x tile (pipelined)
            resident_spec(w1_p), resident_spec(b1_p),          # weights resident
            resident_spec(w2_p), resident_spec(b2_p),
            resident_spec(w3_p), resident_spec(b3_p),
        ],
        out_specs=pl.BlockSpec((TB, out_size), lambda i: (i, 0)),
        compiler_params=pltpu.CompilerParams(
            dimension_semantics=("parallel",),
            vmem_limit_bytes=limit,
        ),
    )(x_in, w1_p, b1_p, w2_p, b2_p, w3_p, b3_p)

    return out if Bp == B else out[:B]


def init_linear_params(key, in_features, out_features):
    # Deterministic init mimicking nn.Linear's U(-1/sqrt(fan_in), +1/sqrt(fan_in)).
    kw, kb = jax.random.split(key)
    bound = 1.0 / (in_features ** 0.5)
    # Stored as (in, out) == transpose of torch's (out, in) weight.
    w = jax.random.uniform(kw, (in_features, out_features), jnp.float32,
                           minval=-bound, maxval=bound)
    b = jax.random.uniform(kb, (1, out_features), jnp.float32,
                           minval=-bound, maxval=bound)
    return w, b


def mlp_reference(x, w1, b1, w2, b2, w3, b3, input_size):
    # Pure-JAX reference with the same bf16-operand / f32-accumulate recipe.
    x2d = x.reshape(-1, input_size).astype(jnp.bfloat16)
    h1 = jnp.maximum(
        jnp.dot(x2d, w1.astype(jnp.bfloat16),
                preferred_element_type=jnp.float32) + b1, 0.0)
    h2 = jnp.maximum(
        jnp.dot(h1.astype(jnp.bfloat16), w2.astype(jnp.bfloat16),
                preferred_element_type=jnp.float32) + b2, 0.0)
    logits = jnp.dot(h2.astype(jnp.bfloat16), w3.astype(jnp.bfloat16),
                     preferred_element_type=jnp.float32) + b3
    return jax.nn.log_softmax(logits, axis=-1)


if __name__ == "__main__":
    # Small MNIST-like shapes: batch=2, channels=1, spatial=8x8 -> input_size=64
    input_size, hidden1, hidden2, output_size = 64, 32, 32, 16

    key = jax.random.PRNGKey(0)
    kx, k1, k2, k3 = jax.random.split(key, 4)

    x = jax.random.normal(kx, (2, 1, 8, 8), jnp.float32)  # NCHW, flattened inside

    w1, b1 = init_linear_params(k1, input_size, hidden1)
    w2, b2 = init_linear_params(k2, hidden1, hidden2)
    w3, b3 = init_linear_params(k3, hidden2, output_size)

    out = mlp_forward(x, w1, b1, w2, b2, w3, b3, input_size)
    out = jax.block_until_ready(out)

    assert out.shape == (2, output_size), out.shape
    # log_softmax rows must sum (in prob space) to ~1
    row_sums = jnp.sum(jnp.exp(out), axis=1)
    assert bool(jnp.all(jnp.abs(row_sums - 1.0) < 1e-3)), row_sums
    # Compare against a pure-JAX reference using the same bf16 matmul recipe.
    ref = mlp_reference(x, w1, b1, w2, b2, w3, b3, input_size)
    assert bool(jnp.allclose(out, ref, atol=2e-2, rtol=2e-2)), (out, ref)

    print("KERNEL_OK")
</pallas_src>

<mosaic_0001>
module attributes {stable_mosaic.version = 11 : i64} {
  func.func @mlp_kernel(%arg0: i32, %arg1: memref<2x64xf32, #tpu.memory_space<vmem>>, %arg2: memref<64x128xbf16, #tpu.memory_space<vmem>>, %arg3: memref<1x128xf32, #tpu.memory_space<vmem>>, %arg4: memref<128x128xbf16, #tpu.memory_space<vmem>>, %arg5: memref<1x128xf32, #tpu.memory_space<vmem>>, %arg6: memref<128x128xbf16, #tpu.memory_space<vmem>>, %arg7: memref<1x128xf32, #tpu.memory_space<vmem>>, %arg8: memref<2x16xf32, #tpu.memory_space<vmem>>) attributes {dimension_semantics = [#tpu.dimension_semantics<parallel>], iteration_bounds = array<i64: 1>, scalar_prefetch = 0 : i64, scratch_operands = 0 : i64, tpu.core_type = #tpu.core_type<tc>, window_params = [{transform_indices = @transform_0, window_bounds = array<i64: 2, 64>}, {pipeline_mode = #tpu.pipeline_mode<synchronous>, transform_indices = @transform_1, window_bounds = array<i64: 64, 128>}, {pipeline_mode = #tpu.pipeline_mode<synchronous>, transform_indices = @transform_2, window_bounds = array<i64: 1, 128>}, {pipeline_mode = #tpu.pipeline_mode<synchronous>, transform_indices = @transform_3, window_bounds = array<i64: 128, 128>}, {pipeline_mode = #tpu.pipeline_mode<synchronous>, transform_indices = @transform_4, window_bounds = array<i64: 1, 128>}, {pipeline_mode = #tpu.pipeline_mode<synchronous>, transform_indices = @transform_5, window_bounds = array<i64: 128, 128>}, {pipeline_mode = #tpu.pipeline_mode<synchronous>, transform_indices = @transform_6, window_bounds = array<i64: 1, 128>}, {transform_indices = @transform_7, window_bounds = array<i64: 2, 16>}]} {
    %c0 = arith.constant 0 : index
    %c0_0 = arith.constant 0 : index
    %0 = vector.load %arg1[%c0, %c0_0] : memref<2x64xf32, #tpu.memory_space<vmem>>, vector<2x64xf32>
    %1 = arith.truncf %0 : vector<2x64xf32> to vector<2x64xbf16>
    %c0_1 = arith.constant 0 : index
    %c0_2 = arith.constant 0 : index
    %2 = vector.load %arg2[%c0_1, %c0_2] : memref<64x128xbf16, #tpu.memory_space<vmem>>, vector<64x128xbf16>
    %cst = arith.constant dense<0.000000e+00> : vector<2x128xf32>
    %3 = tpu.matmul %1, %2, %cst {dimension_numbers = #tpu.dot_dimension_numbers<[1], [0], [0], [1], [0, 0, 1, 1], [], []>} : vector<2x64xbf16>, vector<64x128xbf16>, vector<2x128xf32> -> vector<2x128xf32>
    %c0_3 = arith.constant 0 : index
    %c0_4 = arith.constant 0 : index
    %4 = vector.load %arg3[%c0_3, %c0_4] : memref<1x128xf32, #tpu.memory_space<vmem>>, vector<1x128xf32>
    %5 = vector.broadcast %4 : vector<1x128xf32> to vector<2x128xf32>
    %6 = arith.addf %3, %5 : vector<2x128xf32>
    %cst_5 = arith.constant 0.000000e+00 : f32
    %7 = vector.broadcast %cst_5 : f32 to vector<2x128xf32>
    %8 = arith.maximumf %6, %7 : vector<2x128xf32>
    %9 = arith.truncf %8 : vector<2x128xf32> to vector<2x128xbf16>
    %c0_6 = arith.constant 0 : index
    %c0_7 = arith.constant 0 : index
    %10 = vector.load %arg4[%c0_6, %c0_7] : memref<128x128xbf16, #tpu.memory_space<vmem>>, vector<128x128xbf16>
    %cst_8 = arith.constant dense<0.000000e+00> : vector<2x128xf32>
    %11 = tpu.matmul %9, %10, %cst_8 {dimension_numbers = #tpu.dot_dimension_numbers<[1], [0], [0], [1], [0, 0, 1, 1], [], []>} : vector<2x128xbf16>, vector<128x128xbf16>, vector<2x128xf32> -> vector<2x128xf32>
    %c0_9 = arith.constant 0 : index
    %c0_10 = arith.constant 0 : index
    %12 = vector.load %arg5[%c0_9, %c0_10] : memref<1x128xf32, #tpu.memory_space<vmem>>, vector<1x128xf32>
    %13 = vector.broadcast %12 : vector<1x128xf32> to vector<2x128xf32>
    %14 = arith.addf %11, %13 : vector<2x128xf32>
    %cst_11 = arith.constant 0.000000e+00 : f32
    %15 = vector.broadcast %cst_11 : f32 to vector<2x128xf32>
    %16 = arith.maximumf %14, %15 : vector<2x128xf32>
    %17 = arith.truncf %16 : vector<2x128xf32> to vector<2x128xbf16>
    %c0_12 = arith.constant 0 : index
    %c0_13 = arith.constant 0 : index
    %18 = vector.load %arg6[%c0_12, %c0_13] : memref<128x128xbf16, #tpu.memory_space<vmem>>, vector<128x128xbf16>
    %cst_14 = arith.constant dense<0.000000e+00> : vector<2x128xf32>
    %19 = tpu.matmul %17, %18, %cst_14 {dimension_numbers = #tpu.dot_dimension_numbers<[1], [0], [0], [1], [0, 0, 1, 1], [], []>} : vector<2x128xbf16>, vector<128x128xbf16>, vector<2x128xf32> -> vector<2x128xf32>
    %c0_15 = arith.constant 0 : index
    %c0_16 = arith.constant 0 : index
    %20 = vector.load %arg7[%c0_15, %c0_16] : memref<1x128xf32, #tpu.memory_space<vmem>>, vector<1x128xf32>
    %21 = vector.broadcast %20 : vector<1x128xf32> to vector<2x128xf32>
    %22 = arith.addf %19, %21 : vector<2x128xf32>
    %cst_17 = arith.constant dense<0xFF800000> : vector<2xf32>
    %23 = vector.multi_reduction <maximumf>, %22, %cst_17 [1] : vector<2x128xf32> to vector<2xf32>
    %24 = vector.shape_cast %23 : vector<2xf32> to vector<2x1xf32>
    %25 = vector.broadcast %24 : vector<2x1xf32> to vector<2x128xf32>
    %26 = arith.subf %22, %25 : vector<2x128xf32>
    %27 = math.exp %26 : vector<2x128xf32>
    %cst_18 = arith.constant dense<0.000000e+00> : vector<2xf32>
    %28 = vector.multi_reduction <add>, %27, %cst_18 [1] : vector<2x128xf32> to vector<2xf32>
    %29 = vector.shape_cast %28 : vector<2xf32> to vector<2x1xf32>
    %30 = math.log %29 : vector<2x1xf32>
    %31 = vector.extract_strided_slice %26 {offsets = [0, 0], sizes = [2, 16], strides = [1, 1]} : vector<2x128xf32> to vector<2x16xf32>
    %32 = vector.broadcast %30 : vector<2x1xf32> to vector<2x16xf32>
    %33 = arith.subf %31, %32 : vector<2x16xf32>
    %c0_19 = arith.constant 0 : index
    %c0_20 = arith.constant 0 : index
    %34 = vector.load %arg8[%c0_19, %c0_20] : memref<2x16xf32, #tpu.memory_space<vmem>>, vector<2x16xf32>
    tpu.vector_store %arg8[%c0_19, %c0_20], %33 {strides = array<i32>} : memref<2x16xf32, #tpu.memory_space<vmem>>, vector<2x16xf32>,
    return
  }
  func.func @transform_0(%arg0: i32) -> (i32, i32) {
    %c0_i32 = arith.constant 0 : i32
    %c0_i32_0 = arith.constant 0 : i32
    return %arg0, %c0_i32 : i32, i32
  }
  func.func @transform_1(%arg0: i32) -> (i32, i32) {
    %c0_i32 = arith.constant 0 : i32
    %c0_i32_0 = arith.constant 0 : i32
    %c0_i32_1 = arith.constant 0 : i32
    return %c0_i32, %c0_i32_0 : i32, i32
  }
  func.func @transform_2(%arg0: i32) -> (i32, i32) {
    %c0_i32 = arith.constant 0 : i32
    %c0_i32_0 = arith.constant 0 : i32
    %c0_i32_1 = arith.constant 0 : i32
    return %c0_i32, %c0_i32_0 : i32, i32
  }
  func.func @transform_3(%arg0: i32) -> (i32, i32) {
    %c0_i32 = arith.constant 0 : i32
    %c0_i32_0 = arith.constant 0 : i32
    %c0_i32_1 = arith.constant 0 : i32
    return %c0_i32, %c0_i32_0 : i32, i32
  }
  func.func @transform_4(%arg0: i32) -> (i32, i32) {
    %c0_i32 = arith.constant 0 : i32
    %c0_i32_0 = arith.constant 0 : i32
    %c0_i32_1 = arith.constant 0 : i32
    return %c0_i32, %c0_i32_0 : i32, i32
  }
  func.func @transform_5(%arg0: i32) -> (i32, i32) {
    %c0_i32 = arith.constant 0 : i32
    %c0_i32_0 = arith.constant 0 : i32
    %c0_i32_1 = arith.constant 0 : i32
    return %c0_i32, %c0_i32_0 : i32, i32
  }
  func.func @transform_6(%arg0: i32) -> (i32, i32) {
    %c0_i32 = arith.constant 0 : i32
    %c0_i32_0 = arith.constant 0 : i32
    %c0_i32_1 = arith.constant 0 : i32
    return %c0_i32, %c0_i32_0 : i32, i32
  }
  func.func @transform_7(%arg0: i32) -> (i32, i32) {
    %c0_i32 = arith.constant 0 : i32
    %c0_i32_0 = arith.constant 0 : i32
    return %arg0, %c0_i32 : i32, i32
  }
}

</mosaic_0001>

<bundles_post_ra>
// kernel: tpu_custom_call.1
= control target key start
LH: loop header
LB: loop body
LE: loop exit
PB: predicated region body
PF: predicated region fallthrough
CT: control target
= control target key end

     0   :  { %12 = vsyncpa [#allocation3], 0  ;;  %s658_s0 = inlined_call_operand.hbm [shape: f32[2,64], index: 0, kind: input, shape index: {}]   ;;  %s659_s1 = inlined_call_operand.hbm [shape: bf16[64,128], index: 1, kind: input, shape index: {}]   ;;  %s660_s2 = inlined_call_operand.vmem [shape: f32[1,128], index: 2, kind: input, shape index: {}]   ;;  %s661_s3 = inlined_call_operand.hbm [shape: bf16[128,128], index: 3, kind: input, shape index: {}]   ;;  %s662_s4 = inlined_call_operand.vmem [shape: f32[1,128], index: 4, kind: input, shape index: {}]   ;;  %s663_s5 = inlined_call_operand.hbm [shape: bf16[128,128], index: 5, kind: input, shape index: {}]   ;;  %s664_s6 = inlined_call_operand.vmem [shape: f32[1,128], index: 6, kind: input, shape index: {}]   ;;  %s665_s7 = inlined_call_operand.hbm [shape: f32[2,16], index: 7, kind: output, shape index: {}]  }
   0x1   :  { %13 = vsyncpa [#allocation6], 0 }
   0x2   :  { %14 = vsyncpa [#allocation9], 0  ;;  %s31_s26 = sshll.u32 %s659_s1, 4  ;;  %s32_s26 = int_to_ptr.hbm [resolvable:$true] %s31_s26 }
   0x3   :  { %15 = vsyncpa [#allocation4], 0  ;;  %s587_s27 = smov [#allocation5]   ;;  %s21_s8 = sshll.u32 %s658_s0, 4  ;;  %s22_s8 = int_to_ptr.hbm [resolvable:$true] %s21_s8 }
   0x4   :  { %s33_s28 = sshll.u32 %s587_s27, 4  ;;  %s588_s9 = smov 64   ;;  %s34_s28 = int_to_ptr.vmem [resolvable:$true] %s33_s28 }
   0x5   :  { %s589_s10 = smov 4   ;;  %s590_s11 = smov [#allocation2]  }
   0x6   :  { %39 = dma.hbm_to_vmem [thread:$0]  %s32_s26, 512, %s34_s28, [#allocation6], %s588_s9, %s588_s9, %s589_s10  }
   0x7   :  { %s23_s12 = sshll.u32 %s590_s11, 4  ;;  %s46_s15 = sshll.u32 %s661_s3, 4  ;;  %s24_s12 = int_to_ptr.vmem [resolvable:$true] %s23_s12  ;;  %s47_s15 = int_to_ptr.hbm [resolvable:$true] %s46_s15 }
   0x8   :  { %26 = dma.hbm_to_vmem [thread:$0]  %s22_s8, 32, %s24_s12, [#allocation3]  }
   0x9   :  { %s61_s17 = sshll.u32 %s663_s5, 4  ;;  %s591_s18 = smov [#allocation7]   ;;  %s62_s17 = int_to_ptr.hbm [resolvable:$true] %s61_s17 }
   0xa   :  { %s48_s19 = sshll.u32 %s591_s18, 4  ;;  %s592_s0 = smov [#allocation8]   ;;  %s49_s19 = int_to_ptr.vmem [resolvable:$true] %s48_s19 }
   0xb   :  { %54 = dma.hbm_to_vmem [thread:$0]  %s47_s15, 1024, %s49_s19, [#allocation6], %s588_s9, %s588_s9, %s589_s10  }
   0xc   :  { %s63_s20 = sshll.u32 %s592_s0, 4  ;;  %s64_s20 = int_to_ptr.vmem [resolvable:$true] %s63_s20 }
   0xd   :  { %69 = dma.hbm_to_vmem [thread:$0]  %s62_s17, 1024, %s64_s20, [#allocation9], %s588_s9, %s588_s9, %s589_s10  }
   0xe   :  { %579 = dma.done.wait [#allocation3], 32  }
   0xf   :  { %580 = vsyncadd [#allocation3], 4294967264 }
  0x10   :  { %581 = dma.done.wait [#allocation6], 1536  }
  0x11   :  { %582 = vsyncadd [#allocation6], 4294965760 }
  0x12   :  { %583 = dma.done.wait [#allocation9], 1024  }
  0x13   :  { %584 = vsyncadd [#allocation9], 4294966272  ;;  %v428_v0 = vld [vmem:[#allocation5 + $0x18] sm:$0xff]  ;;  %v427_v2 = vld [vmem:[#allocation5 + $0x10] sm:$0xff]  ;;  %vm127_vm0 = vcmask 523264   ;;  %vm310_vm1 = vcmask 1041408  }
  0x14   :  { %v436_v1 = vld [vmem:[#allocation7 + $0x38] sm:$0xff]  ;;  %135 = vmatpush.bf16.msra.mxu0 %v428_v0  ;;  %v435_v3 = vld [vmem:[#allocation7 + $0x30] sm:$0xff]  ;;  %v426_v4 = vld [vmem:[#allocation5 + $0x8] sm:$0xff]  ;;  %s332_s26 = sshll.u32 %s665_s7, 4  ;;  %vm323_vm2 = vcmask 123904   ;;  %s333_s26 = int_to_ptr.hbm [resolvable:$true] %s332_s26 }
  0x15   :  { %214 = vmatpush.bf16.msra.mxu1 %v436_v1  ;;  %v434_v5 = vld [vmem:[#allocation7 + $0x28] sm:$0xff]  ;;  %v425_v6 = vld [vmem:[#allocation5] sm:$0xff]  ;;  %v89_v7 = vld [vmem:[#allocation2] sm:$0x3] }
  0x16   :  { %v433_v8 = vld [vmem:[#allocation7 + $0x20] sm:$0xff]  ;;  %v90_v9 = vpack.c.bf16 %v89_v7, %v89_v7  ;;  %v432_v10 = vld [vmem:[#allocation7 + $0x18] sm:$0xff]  ;;  %v431_v11 = vld [vmem:[#allocation7 + $0x10] sm:$0xff] }
  0x17   :  { %v430_v12 = vld [vmem:[#allocation7 + $0x8] sm:$0xff]  ;;  %v429_v13 = vld [vmem:[#allocation7] sm:$0xff]  ;;  %v444_v14 = vld [vmem:[#allocation8 + $0x38] sm:$0xff] }
  0x18   :  { %136 = vmatpush.bf16.msra.mxu0 %v427_v2  ;;  %297 = vmatpush.bf16.msra.mxu2 %v444_v14  ;;  %v443_v15 = vld [vmem:[#allocation8 + $0x30] sm:$0xff]  ;;  %v442_v16 = vld [vmem:[#allocation8 + $0x28] sm:$0xff]  ;;  %v441_v17 = vld [vmem:[#allocation8 + $0x20] sm:$0xff] }
  0x19   :  { %215 = vmatpush.bf16.msra.mxu1 %v435_v3  ;;  %v440_v18 = vld [vmem:[#allocation8 + $0x18] sm:$0xff]  ;;  %v439_v19 = vld [vmem:[#allocation8 + $0x10] sm:$0xff]  ;;  %v438_v26 = vld [vmem:[#allocation8 + $0x8] sm:$0xff] }
  0x1a   :  { %v452_v20 = vld [vmem:[%s660_s2] ss:$0 sm:$0xff]  ;;  %v437_v27 = vld [vmem:[#allocation8] sm:$0xff] }
  0x1b   :  { %v453_v28 = vld [vmem:[%s662_s4] ss:$0 sm:$0xff]  ;;  %s593_s4 = smov [#allocation10]  }
  0x1c   :  { %137 = vmatpush.bf16.msra.mxu0 %v426_v4  ;;  %298 = vmatpush.bf16.msra.mxu2 %v443_v15  ;;  %v454_v34 = vld [vmem:[%s664_s6] ss:$0 sm:$0xff]  ;;  %s330_s24 = sshll.u32 %s593_s4, 4  ;;  %s331_s24 = int_to_ptr.vmem [resolvable:$true] %s330_s24 }
  0x1d   :  { %216 = vmatpush.bf16.msra.mxu1 %v434_v5 }
  0x20   :  { %138 = vmatpush.bf16.msra.mxu0 %v425_v6  ;;  %299 = vmatpush.bf16.msra.mxu2 %v442_v16 }
  0x21   :  { %217 = vmatpush.bf16.msra.mxu1 %v433_v8 }
  0x23   :  { %360 = vmatmul.msk.bf16.vlgmr.msra.gmra.mxu0 %vm127_vm0, %v90_v9 }
  0x24   :  { %300 = vmatpush.bf16.msra.mxu2 %v441_v17 }
  0x25   :  { %218 = vmatpush.bf16.msra.mxu1 %v432_v10 }
  0x28   :  { %301 = vmatpush.bf16.msra.mxu2 %v440_v18 }
  0x29   :  { %219 = vmatpush.bf16.msra.mxu1 %v431_v11 }
  0x2c   :  { %302 = vmatpush.bf16.msra.mxu2 %v439_v19 }
  0x2d   :  { %220 = vmatpush.bf16.msra.mxu1 %v430_v12 }
  0x30   :  { %303 = vmatpush.bf16.msra.mxu2 %v438_v26 }
  0x31   :  { %221 = vmatpush.bf16.msra.mxu1 %v429_v13 }
  0x34   :  { %304 = vmatpush.bf16.msra.mxu2 %v437_v27 }
  0xa0   :  { %v140_v21 = vpop.f32.mrf.mxu0 }
  0xa1   :  { %v141_v22 = vadd.f32 %v452_v20, %v140_v21 }
  0xa3   :  { %v144_v23 = vmax.f32 %v141_v22, 0.0 }
  0xa5   :  { %v145_v24 = vpack.c.bf16 %v144_v23, %v144_v23 }
  0xa7   :  { %222 = vmatmul.bf16.vlgmr.msra.gmra.mxu1 %v145_v24 }
  0xa8   :  { %v142_v25 = vpop.f32.mrf.mxu0 }
 0x124   :  { %v223_v29 = vpop.f32.mrf.mxu1 }
 0x125   :  { %v224_v30 = vadd.f32 %v453_v28, %v223_v29 }
 0x127   :  { %v227_v31 = vmax.f32 %v224_v30, 0.0 }
 0x129   :  { %v228_v32 = vpack.c.bf16 %v227_v31, %v227_v31 }
 0x12b   :  { %305 = vmatmul.bf16.vlgmr.msra.gmra.mxu2 %v228_v32 }
 0x12c   :  { %v225_v33 = vpop.f32.mrf.mxu1 }
 0x1ae   :  { %v306_v35 = vpop.f32.mrf.mxu2 }
 0x1af   :  { %v307_v36 = vadd.f32 %v454_v34, %v306_v35 }
 0x1b1   :  { %v311_v37 = vsel %vm310_vm1, %v307_v36, -inf }
 0x1b2   :  { %312 = vmax.xlane.f32.xlu0 %v311_v37 }
 0x1b6   :  { %v308_v38 = vpop.f32.mrf.mxu2 }
 0x225   :  { %v313_v39 = vpop.xlane.xlu0 %312 }
 0x226   :  { %v314_v40 = vsub.f32 %v307_v36, %v313_v39 }
 0x228   :  { %v315_v41 = vmul.f32 1.442695, %v314_v40 }
 0x22a   :  { %455 = vpow2.f32 %v315_v41 }
 0x230   :  { %v456_v42 = vpop.eup %455 }
 0x231   :  { %v317_v43 = vsel %vm310_vm1, %v456_v42, 0.0 }
 0x232   :  { %318 = vadd.xlane.f32.xlu0 %v317_v43 }
 0x2a5   :  { %v319_v44 = vpop.xlane.xlu0 %318 }
 0x2a6   :  { %457 = vlog2.f32 %v319_v44 }
 0x2ac   :  { %v458_v45 = vpop.eup %457 }
 0x2ad   :  { %v321_v46 = vmul.f32 0.6931472, %v458_v45 }
 0x2af   :  { %v322_v47 = vsub.f32 %v314_v40, %v321_v46 }
 0x2b1   :  { %324 = vst.msk [vmem:[#allocation10] sm:$0x3] %vm323_vm2, %v322_v47 }
 0x2b2   :  { %335 = dma.vmem_to_hbm [thread:$0]  %s331_s24, 32, %s333_s26, [#allocation4]  }
 0x2b3   :  { %585 = dma.done.wait [#allocation4], 32  }
 0x2b4   :  { %586 = vsyncadd [#allocation4], 4294967264 }
 0x2b5   :  { %340 = vsyncpa [#allocation3], 1 }
 0x2b6   :  { %341 = vsyncpa [#allocation6], 1 }
 0x2b7   :  { %342 = vsyncpa [#allocation9], 1 }
 0x2b8   :  { %343 = vsyncpa [#allocation4], 1 }

</bundles_post_ra>
